<compile_context>
chip_gen: v7x
topology: tpu7x:2x2x1
jax: 0.10.0
libtpu: 0.0.40
codegen_flags: <defaults>
</compile_context>

<pallas_src>
import functools
import numpy as np

import jax
import jax.numpy as jnp
from jax.experimental import pallas as pl
from jax.experimental.pallas import tpu as pltpu

N_QUBITS = 5
DIM = 2 ** N_QUBITS              # 32
NUM_WEIGHTS = 2 * N_QUBITS       # 10

_N_LOW = 3                       # low qubits handled via select (8-row base)
_LOW_DIM = 2 ** _N_LOW           # 8
_CHUNK = 512                     # inner lane-chunk width (vreg-resident compute)


# ----------------------------- glue (parameter setup) -----------------------

def _ry(theta):
    """Real 2x2 RY(theta) gate."""
    c = jnp.cos(theta / 2.0)
    s = jnp.sin(theta / 2.0)
    return jnp.stack([jnp.stack([c, -s]), jnp.stack([s, c])])


def _ry_layer(thetas):
    """kron_{q} RY(thetas[q]) — qubit 0 is the most-significant bit."""
    mats = [_ry(thetas[q]) for q in range(N_QUBITS)]
    return functools.reduce(jnp.kron, mats)


def _cnot_matrix(control, target, n):
    idx = np.arange(2 ** n)
    ctrl_bit = (idx >> (n - 1 - control)) & 1
    flipped = idx ^ (ctrl_bit << (n - 1 - target))
    mat = np.zeros((2 ** n, 2 ** n), np.float32)
    mat[flipped, idx] = 1.0      # |flipped><idx|
    return jnp.asarray(mat)


def _cnot_ring():
    u = jnp.eye(DIM, dtype=jnp.float32)
    for q in range(N_QUBITS):
        u = _cnot_matrix(q, (q + 1) % N_QUBITS, N_QUBITS) @ u
    return u


_CNOT_RING = _cnot_ring()


def _zsign_matrix():
    """zsign[i, q] = +1 if bit q of basis state i is 0 else -1."""
    idx = np.arange(DIM)
    bits = (idx[:, None] >> (N_QUBITS - 1 - np.arange(N_QUBITS))[None, :]) & 1
    return jnp.asarray(1.0 - 2.0 * bits, dtype=jnp.float32)


_ZSIGN = _zsign_matrix()          # (DIM, N_QUBITS)
_ZSIGN_T = _ZSIGN.T               # (N_QUBITS, DIM): for <Z_q> matmul


def _cos_mask():
    """(LOW_DIM, N_LOW): 1.0 where the low-qubit bit is 0 (pick cos), else 0."""
    r = np.arange(_LOW_DIM)
    bits = (r[:, None] >> (_N_LOW - 1 - np.arange(_N_LOW))[None, :]) & 1
    return jnp.asarray((bits == 0).astype(np.float32))


_COS_MASK = _cos_mask()           # (8, 3)


def _circuit_unitary(weights):
    """Weight-dependent part of the circuit: V = L2 @ Cring @ L1 @ Cring."""
    l1 = _ry_layer(weights[:N_QUBITS])
    l2 = _ry_layer(weights[N_QUBITS:])
    return l2 @ _CNOT_RING @ l1 @ _CNOT_RING


# ----------------------------- Pallas kernel (hot path) ---------------------

def _circuit_kernel(x_ref, v_ref, zsignT_ref, cmask_ref, out_ref):
    # x_ref:      (N_QUBITS, TB)    input angles, batch on the lane axis
    # v_ref:      (DIM, DIM)        circuit unitary V (resident)
    # zsignT_ref: (N_QUBITS, DIM)   Z-sign table, transposed (resident)
    # cmask_ref:  (LOW_DIM, N_LOW)  1.0 -> pick cos, 0.0 -> pick sin (resident)
    # out_ref:    (N_QUBITS, TB)    <Z_q> expectations, batch on the lane axis
    v = v_ref[...]                                    # (32, 32), ~4 vregs
    zt = zsignT_ref[...]                              # (5, 32)
    cm = cmask_ref[...]                               # (8, 3)
    pick_cos = [cm[:, i:i + 1] > 0.5 for i in range(_N_LOW)]   # (8, 1) masks

    tb = x_ref.shape[1]
    for j in range(tb // _CHUNK):                     # register-resident chunks
        lo, hi = j * _CHUNK, (j + 1) * _CHUNK
        half = x_ref[:, lo:hi] * 0.5                  # (5, W)
        c = jnp.cos(half)
        s = jnp.sin(half)

        # 8-row partial product over the 3 low qubits (2,3,4) via vselect:
        #   p[r, b] = prod_col (c if bit==0 else s)
        p = None
        for i, q in enumerate(range(N_QUBITS - _N_LOW, N_QUBITS)):
            fac = jnp.where(pick_cos[i], c[q:q + 1, :], s[q:q + 1, :])   # (8, W)
            p = fac if p is None else p * fac

        # Kronecker doubling over the remaining qubits (1 then 0): 8->16->32
        # rows.  Both concat operands are 8-sublane aligned -> pure vreg
        # placement, no data movement.
        for q in range(N_QUBITS - _N_LOW - 1, -1, -1):
            p = jnp.concatenate([c[q:q + 1, :] * p, s[q:q + 1, :] * p], axis=0)

        # psi = V @ amp        (MXU, 32x32 x 32xW)
        psi = jnp.dot(v, p, preferred_element_type=jnp.float32)         # (32, W)
        # <Z_q> = Zsign^T @ (psi*psi)   (MXU, 5x32 x 32xW)
        out_ref[:, lo:hi] = jnp.dot(zt, psi * psi,
                                    preferred_element_type=jnp.float32)


# ----------------------------- wrapper ---------------------------------------

def _round_up(x, m):
    return ((x + m - 1) // m) * m


def _cdiv(a, b):
    return (a + b - 1) // b


def _choose_tiling(batch, tile_b):
    """Pick (tile, padded_batch): tiles are multiples of _CHUNK, split the
    batch near-evenly (no pathological last-tile padding), respect the tile_b
    cap, and use >=2 grid steps when there is enough work (v7x megacore)."""
    b_min = _round_up(max(int(batch), 1), _CHUNK)
    n_ch = b_min // _CHUNK
    cap_ch = max(1, min(int(tile_b), b_min) // _CHUNK)
    min_steps = _cdiv(n_ch, cap_ch)
    if n_ch > 1:
        min_steps = max(min_steps, 2)
    best = None
    for k in range(min_steps, min(n_ch, min_steps + 4) + 1):
        tb_ch = _cdiv(n_ch, k)
        total = k * tb_ch
        key = (total, k)                  # minimize padding, then step count
        if best is None or key < best[0]:
            best = (key, tb_ch * _CHUNK, total * _CHUNK)
    return best[1], best[2]


@functools.partial(jax.jit, static_argnames=("tile_b",))
def torch_layer_forward(inputs, weights, *, tile_b=8192):
    """Equivalent of TorchLayer.forward: vmap(circuit, (0, None))(inputs, weights)."""
    inputs = inputs.astype(jnp.float32)
    weights = weights.astype(jnp.float32)
    batch = inputs.shape[0]

    tb, b_pad = _choose_tiling(batch, tile_b)
    assert tb % _CHUNK == 0 and b_pad % tb == 0
    grid = (b_pad // tb,)

    # Lane-dense layout (batch last); pad columns are zero angles (cos=1,
    # sin=0 -> well-defined), sliced off below.  Under jit the transpose+pad
    # fuse into a single HBM pass with the rest of the program.
    x_t = jnp.zeros((N_QUBITS, b_pad), jnp.float32).at[:, :batch].set(inputs.T)

    v = _circuit_unitary(weights).astype(jnp.float32)              # (DIM, DIM)

    flops = b_pad * (2 * DIM * (DIM + N_QUBITS) + 160)
    bytes_accessed = 4 * (2 * N_QUBITS * b_pad + DIM * DIM
                          + N_QUBITS * DIM + _LOW_DIM * _N_LOW)

    out_t = pl.pallas_call(
        _circuit_kernel,
        out_shape=jax.ShapeDtypeStruct((N_QUBITS, b_pad), jnp.float32),
        grid=grid,
        in_specs=[
            pl.BlockSpec((N_QUBITS, tb), lambda i: (0, i)),     # x: tiled batch
            pl.BlockSpec((DIM, DIM), lambda i: (0, 0)),         # V: resident
            pl.BlockSpec((N_QUBITS, DIM), lambda i: (0, 0)),    # Zsign^T: resident
            pl.BlockSpec((_LOW_DIM, _N_LOW), lambda i: (0, 0)), # cos-select mask
        ],
        out_specs=pl.BlockSpec((N_QUBITS, tb), lambda i: (0, i)),
        compiler_params=pltpu.CompilerParams(
            dimension_semantics=("parallel",),                  # 2 TCs on v7x
        ),
        cost_estimate=pl.CostEstimate(
            flops=flops,
            transcendentals=2 * N_QUBITS * b_pad,
            bytes_accessed=bytes_accessed,
        ),
    )(x_t, v, _ZSIGN_T, _COS_MASK)

    return out_t[:, :batch].T                                    # (B, N_QUBITS)


# ----------------------------- pure-JAX reference ----------------------------

def _reference(inputs, weights):
    v = _circuit_unitary(weights)

    def one(x):
        half = x * 0.5
        states = [jnp.stack([jnp.cos(half[q]), jnp.sin(half[q])])
                  for q in range(N_QUBITS)]
        psi0 = functools.reduce(jnp.kron, states)
        psi = v @ psi0
        return (psi * psi) @ _ZSIGN

    # torch.vmap(circuit, in_dims=(0, None)) semantics: batch over inputs only.
    return jax.vmap(one, in_axes=0)(inputs)


# ----------------------------- main ------------------------------------------

if __name__ == "__main__":
    key = jax.random.PRNGKey(0)
    k_in, k_w = jax.random.split(key)

    # Parameter init mirrors torch.randn(num_weights), deterministic here.
    weights = jax.random.normal(k_w, (NUM_WEIGHTS,), dtype=jnp.float32)

    # Small batch: single grid step, single inner chunk, heavy zero-padding.
    batch = 8
    inputs = jax.random.normal(k_in, (batch, N_QUBITS), dtype=jnp.float32)
    out = jax.block_until_ready(torch_layer_forward(inputs, weights))
    ref = jax.block_until_ready(_reference(inputs, weights))
    assert out.shape == (batch, N_QUBITS)
    assert jnp.allclose(out, ref, atol=1e-5, rtol=1e-5), (out, ref)

    # Moderate padding within a single 512-lane tile.
    batch2 = 300
    inputs2 = jax.random.normal(k_in, (batch2, N_QUBITS), dtype=jnp.float32)
    out2 = jax.block_until_ready(torch_layer_forward(inputs2, weights))
    ref2 = jax.block_until_ready(_reference(inputs2, weights))
    assert out2.shape == (batch2, N_QUBITS)
    assert jnp.allclose(out2, ref2, atol=1e-5, rtol=1e-5)

    # Multi-step grid + multi-chunk tiles: 2 grid steps x 2 inner chunks.
    batch3 = 2048
    inputs3 = jax.random.normal(k_in, (batch3, N_QUBITS), dtype=jnp.float32)
    out3 = jax.block_until_ready(torch_layer_forward(inputs3, weights))
    ref3 = jax.block_until_ready(_reference(inputs3, weights))
    assert out3.shape == (batch3, N_QUBITS)
    assert jnp.allclose(out3, ref3, atol=1e-5, rtol=1e-5)

    print("KERNEL_OK")
</pallas_src>

<mosaic_0001>
module attributes {stable_mosaic.version = 11 : i64} {
  func.func @_circuit_kernel(%arg0: i32, %arg1: memref<5x512xf32, #tpu.memory_space<vmem>>, %arg2: memref<32x32xf32, #tpu.memory_space<vmem>>, %arg3: memref<5x32xf32, #tpu.memory_space<vmem>>, %arg4: memref<8x3xf32, #tpu.memory_space<vmem>>, %arg5: memref<5x512xf32, #tpu.memory_space<vmem>>) attributes {dimension_semantics = [#tpu.dimension_semantics<parallel>], iteration_bounds = array<i64: 1>, scalar_prefetch = 0 : i64, scratch_operands = 0 : i64, tpu.core_type = #tpu.core_type<tc>, window_params = [{transform_indices = @transform_0, window_bounds = array<i64: 5, 512>}, {pipeline_mode = #tpu.pipeline_mode<synchronous>, transform_indices = @transform_1, window_bounds = array<i64: 32, 32>}, {pipeline_mode = #tpu.pipeline_mode<synchronous>, transform_indices = @transform_2, window_bounds = array<i64: 5, 32>}, {pipeline_mode = #tpu.pipeline_mode<synchronous>, transform_indices = @transform_3, window_bounds = array<i64: 8, 3>}, {transform_indices = @transform_4, window_bounds = array<i64: 5, 512>}]} {
    %c0 = arith.constant 0 : index
    %c0_0 = arith.constant 0 : index
    %0 = vector.load %arg2[%c0, %c0_0] : memref<32x32xf32, #tpu.memory_space<vmem>>, vector<32x32xf32>
    %c0_1 = arith.constant 0 : index
    %c0_2 = arith.constant 0 : index
    %1 = vector.load %arg3[%c0_1, %c0_2] : memref<5x32xf32, #tpu.memory_space<vmem>>, vector<5x32xf32>
    %c0_3 = arith.constant 0 : index
    %c0_4 = arith.constant 0 : index
    %2 = vector.load %arg4[%c0_3, %c0_4] : memref<8x3xf32, #tpu.memory_space<vmem>>, vector<8x3xf32>
    %3 = vector.extract_strided_slice %2 {offsets = [0, 0], sizes = [8, 1], strides = [1, 1]} : vector<8x3xf32> to vector<8x1xf32>
    %cst = arith.constant 5.000000e-01 : f32
    %4 = vector.broadcast %cst : f32 to vector<8x1xf32>
    %5 = arith.cmpf ogt, %3, %4 : vector<8x1xf32>
    %6 = vector.extract_strided_slice %2 {offsets = [0, 1], sizes = [8, 1], strides = [1, 1]} : vector<8x3xf32> to vector<8x1xf32>
    %cst_5 = arith.constant 5.000000e-01 : f32
    %7 = vector.broadcast %cst_5 : f32 to vector<8x1xf32>
    %8 = arith.cmpf ogt, %6, %7 : vector<8x1xf32>
    %9 = vector.extract_strided_slice %2 {offsets = [0, 2], sizes = [8, 1], strides = [1, 1]} : vector<8x3xf32> to vector<8x1xf32>
    %cst_6 = arith.constant 5.000000e-01 : f32
    %10 = vector.broadcast %cst_6 : f32 to vector<8x1xf32>
    %11 = arith.cmpf ogt, %9, %10 : vector<8x1xf32>
    %c0_7 = arith.constant 0 : index
    %c0_8 = arith.constant 0 : index
    %12 = vector.load %arg1[%c0_7, %c0_8] : memref<5x512xf32, #tpu.memory_space<vmem>>, vector<5x512xf32>
    %cst_9 = arith.constant 5.000000e-01 : f32
    %13 = vector.broadcast %cst_9 : f32 to vector<5x512xf32>
    %14 = arith.mulf %12, %13 : vector<5x512xf32>
    %15 = math.cos %14 : vector<5x512xf32>
    %16 = math.sin %14 : vector<5x512xf32>
    %17 = vector.extract_strided_slice %15 {offsets = [2, 0], sizes = [1, 512], strides = [1, 1]} : vector<5x512xf32> to vector<1x512xf32>
    %18 = vector.extract_strided_slice %16 {offsets = [2, 0], sizes = [1, 512], strides = [1, 1]} : vector<5x512xf32> to vector<1x512xf32>
    %19 = vector.shape_cast %5 : vector<8x1xi1> to vector<8x1xi1>
    %20 = vector.broadcast %19 : vector<8x1xi1> to vector<8x512xi1>
    %21 = vector.shape_cast %17 : vector<1x512xf32> to vector<1x512xf32>
    %22 = vector.broadcast %21 : vector<1x512xf32> to vector<8x512xf32>
    %23 = vector.shape_cast %18 : vector<1x512xf32> to vector<1x512xf32>
    %24 = vector.broadcast %23 : vector<1x512xf32> to vector<8x512xf32>
    %25 = arith.select %20, %22, %24 : vector<8x512xi1>, vector<8x512xf32>
    %26 = vector.extract_strided_slice %15 {offsets = [3, 0], sizes = [1, 512], strides = [1, 1]} : vector<5x512xf32> to vector<1x512xf32>
    %27 = vector.extract_strided_slice %16 {offsets = [3, 0], sizes = [1, 512], strides = [1, 1]} : vector<5x512xf32> to vector<1x512xf32>
    %28 = vector.shape_cast %8 : vector<8x1xi1> to vector<8x1xi1>
    %29 = vector.broadcast %28 : vector<8x1xi1> to vector<8x512xi1>
    %30 = vector.shape_cast %26 : vector<1x512xf32> to vector<1x512xf32>
    %31 = vector.broadcast %30 : vector<1x512xf32> to vector<8x512xf32>
    %32 = vector.shape_cast %27 : vector<1x512xf32> to vector<1x512xf32>
    %33 = vector.broadcast %32 : vector<1x512xf32> to vector<8x512xf32>
    %34 = arith.select %29, %31, %33 : vector<8x512xi1>, vector<8x512xf32>
    %35 = arith.mulf %25, %34 : vector<8x512xf32>
    %36 = vector.extract_strided_slice %15 {offsets = [4, 0], sizes = [1, 512], strides = [1, 1]} : vector<5x512xf32> to vector<1x512xf32>
    %37 = vector.extract_strided_slice %16 {offsets = [4, 0], sizes = [1, 512], strides = [1, 1]} : vector<5x512xf32> to vector<1x512xf32>
    %38 = vector.shape_cast %11 : vector<8x1xi1> to vector<8x1xi1>
    %39 = vector.broadcast %38 : vector<8x1xi1> to vector<8x512xi1>
    %40 = vector.shape_cast %36 : vector<1x512xf32> to vector<1x512xf32>
    %41 = vector.broadcast %40 : vector<1x512xf32> to vector<8x512xf32>
    %42 = vector.shape_cast %37 : vector<1x512xf32> to vector<1x512xf32>
    %43 = vector.broadcast %42 : vector<1x512xf32> to vector<8x512xf32>
    %44 = arith.select %39, %41, %43 : vector<8x512xi1>, vector<8x512xf32>
    %45 = arith.mulf %35, %44 : vector<8x512xf32>
    %46 = vector.extract_strided_slice %15 {offsets = [1, 0], sizes = [1, 512], strides = [1, 1]} : vector<5x512xf32> to vector<1x512xf32>
    %47 = vector.broadcast %46 : vector<1x512xf32> to vector<8x512xf32>
    %48 = arith.mulf %47, %45 : vector<8x512xf32>
    %49 = vector.extract_strided_slice %16 {offsets = [1, 0], sizes = [1, 512], strides = [1, 1]} : vector<5x512xf32> to vector<1x512xf32>
    %50 = vector.broadcast %49 : vector<1x512xf32> to vector<8x512xf32>
    %51 = arith.mulf %50, %45 : vector<8x512xf32>
    %52 = tpu.concatenate %48, %51 in 0 : vector<8x512xf32>, vector<8x512xf32> -> vector<16x512xf32>
    %53 = vector.extract_strided_slice %15 {offsets = [0, 0], sizes = [1, 512], strides = [1, 1]} : vector<5x512xf32> to vector<1x512xf32>
    %54 = vector.broadcast %53 : vector<1x512xf32> to vector<16x512xf32>
    %55 = arith.mulf %54, %52 : vector<16x512xf32>
    %56 = vector.extract_strided_slice %16 {offsets = [0, 0], sizes = [1, 512], strides = [1, 1]} : vector<5x512xf32> to vector<1x512xf32>
    %57 = vector.broadcast %56 : vector<1x512xf32> to vector<16x512xf32>
    %58 = arith.mulf %57, %52 : vector<16x512xf32>
    %59 = tpu.concatenate %55, %58 in 0 : vector<16x512xf32>, vector<16x512xf32> -> vector<32x512xf32>
    %cst_10 = arith.constant dense<0.000000e+00> : vector<32x512xf32>
    %60 = tpu.matmul %0, %59, %cst_10 {dimension_numbers = #tpu.dot_dimension_numbers<[1], [0], [0], [1], [0, 0, 1, 1], [], []>} : vector<32x32xf32>, vector<32x512xf32>, vector<32x512xf32> -> vector<32x512xf32>
    %61 = arith.mulf %60, %60 : vector<32x512xf32>
    %cst_11 = arith.constant dense<0.000000e+00> : vector<5x512xf32>
    %62 = tpu.matmul %1, %61, %cst_11 {dimension_numbers = #tpu.dot_dimension_numbers<[1], [0], [0], [1], [0, 0, 1, 1], [], []>} : vector<5x32xf32>, vector<32x512xf32>, vector<5x512xf32> -> vector<5x512xf32>
    %c0_12 = arith.constant 0 : index
    %c0_13 = arith.constant 0 : index
    %63 = vector.load %arg5[%c0_12, %c0_13] : memref<5x512xf32, #tpu.memory_space<vmem>>, vector<5x512xf32>
    tpu.vector_store %arg5[%c0_12, %c0_13], %62 {strides = array<i32>} : memref<5x512xf32, #tpu.memory_space<vmem>>, vector<5x512xf32>,
    return
  }
  func.func @transform_0(%arg0: i32) -> (i32, i32) {
    %c0_i32 = arith.constant 0 : i32
    %c0_i32_0 = arith.constant 0 : i32
    return %c0_i32, %arg0 : i32, i32
  }
  func.func @transform_1(%arg0: i32) -> (i32, i32) {
    %c0_i32 = arith.constant 0 : i32
    %c0_i32_0 = arith.constant 0 : i32
    %c0_i32_1 = arith.constant 0 : i32
    return %c0_i32, %c0_i32_0 : i32, i32
  }
  func.func @transform_2(%arg0: i32) -> (i32, i32) {
    %c0_i32 = arith.constant 0 : i32
    %c0_i32_0 = arith.constant 0 : i32
    %c0_i32_1 = arith.constant 0 : i32
    return %c0_i32, %c0_i32_0 : i32, i32
  }
  func.func @transform_3(%arg0: i32) -> (i32, i32) {
    %c0_i32 = arith.constant 0 : i32
    %c0_i32_0 = arith.constant 0 : i32
    %c0_i32_1 = arith.constant 0 : i32
    return %c0_i32, %c0_i32_0 : i32, i32
  }
  func.func @transform_4(%arg0: i32) -> (i32, i32) {
    %c0_i32 = arith.constant 0 : i32
    %c0_i32_0 = arith.constant 0 : i32
    return %c0_i32, %arg0 : i32, i32
  }
}

</mosaic_0001>

<bundles_post_ra>
// kernel: torch_layer_forward.1
= control target key start
LH: loop header
LB: loop body
LE: loop exit
PB: predicated region body
PF: predicated region fallthrough
CT: control target
= control target key end

     0   :  { %v1557_v0 = vmov 0   ;;  %v1558_v2 = vmov 2   ;;  %v1559_v12 = vmov 1   ;;  %v1560_v37 = vmov 683565275   ;;  %s2132_s3 = inlined_call_operand.vmem [shape: f32[8,3], index: 3, kind: input, shape index: {}]   ;;  %s2133_s0 = inlined_call_operand.vmem [shape: f32[5,512], index: 0, kind: input, shape index: {}]   ;;  %s2134_s1 = inlined_call_operand.vmem [shape: f32[32,32], index: 1, kind: input, shape index: {}]   ;;  %s2135_s2 = inlined_call_operand.vmem [shape: f32[5,32], index: 2, kind: input, shape index: {}]   ;;  %s2136_s4 = inlined_call_operand.vmem [shape: f32[5,512], index: 4, kind: output, shape index: {}]  }
   0x1   :  { %1537 = vset.pattern.permute.xlu0 %v1557_v0  ;;  %v22_v1 = vld [vmem:[%s2132_s3] sm:$0xff]  ;;  %1539 = vset.pattern.permute.xlu1 %v1558_v2  ;;  %v25_v5 = vld [vmem:[%s2133_s0 + $0x8] sm:$0x1f]  ;;  %v26_v6 = vld [vmem:[%s2133_s0 + $0x10] sm:$0x1f] }
   0x2   :  { %vm23_vm0 = vcmp.gt.f32.partialorder %v22_v1, 0.5  ;;  %v24_v4 = vld [vmem:[%s2133_s0] sm:$0x1f]  ;;  %v1606_v8 = vmul.f32 0.5, %v25_v5  ;;  %v1608_v9 = vmul.f32 0.5, %v26_v6 }
   0x3   :  { %v860_v3 = vsel %vm23_vm0, 1, %v1557_v0  ;;  %v1604_v7 = vmul.f32 0.5, %v24_v4  ;;  %v1561_v39 = vmov 2475754826   ;;  %v1562_v41 = vmov 2131351028  }
   0x4   :  { %862 = vperm.xlu0 %1537, %v860_v3   ;;  %946 = vperm.xlu1 %1539, %v860_v3   ;;  %v135_v13 = vand.u32 2147483647, %v1606_v8  ;;  %v138_v14 = vand.u32 2139095040, %v1606_v8  ;;  %v241_v19 = vand.u32 2139095040, %v1608_v9  ;;  %v1563_v43 = vmov 2102212464  }
   0x5   :  { %v32_v10 = vand.u32 2147483647, %v1604_v7  ;;  %v35_v11 = vand.u32 2139095040, %v1604_v7  ;;  %v1564_v45 = vmov 920167782  }
   0x6   :  { %v139_v17 = vshrl.u32 %v138_v14, 23  ;;  %v142_v18 = vand.u32 8388607, %v135_v13  ;;  %v242_v22 = vshrl.u32 %v241_v19, 23  ;;  %v1565_v53 = vmov 1326507024  }
   0x7   :  { %v36_v15 = vshrl.u32 %v35_v11, 23  ;;  %v39_v16 = vand.u32 8388607, %v32_v10 }
   0x8   :  { %1538 = vset.pattern.permute.xlu0 %v1559_v12  ;;  %v1441_v21 = vadd.s32 4294967169, %v139_v17  ;;  %v143_v25 = vor.u32 8388608, %v142_v18  ;;  %v1445_v27 = vadd.s32 4294967169, %v242_v22 }
   0x9   :  { %902 = vperm.xlu0 %1538, %v860_v3   ;;  %v1437_v20 = vadd.s32 4294967169, %v36_v15  ;;  %v40_v24 = vor.u32 8388608, %v39_v16 }
   0xa   :  { %v145_v26 = vadd.s32 1, %v1441_v21  ;;  %v1621_v34 = vshll.u32 %v143_v25, 8  ;;  %v1623_v35 = vadd.s32 1, %v1445_v27 }
   0xb   :  { %v42_v23 = vadd.s32 1, %v1437_v20  ;;  %v1619_v32 = vshll.u32 %v40_v24, 8 }
   0xc   :  { %vm146_vm2 = vcmp.gt.s32.totalorder %v145_v26, 0  ;;  %vm249_vm7 = vcmp.gt.s32.totalorder %v1623_v35, 0 }
   0xd   :  { %1540 = vset.pattern.permute.xlu0 %v1558_v2  ;;  %vm43_vm1 = vcmp.gt.s32.totalorder %v42_v23, 0  ;;  %v147_v31 = vsel %vm146_vm2, %v145_v26, 0 }
   0xe   :  { %v44_v28 = vsel %vm43_vm1, %v42_v23, 0  ;;  %v149_v33 = vand.u32 31, %v147_v31  ;;  %v1630_v47 = vshrl.u32 %v147_v31, 5 }
   0xf   :  { %v45_v29 = vshrl.u32 %v44_v28, 5  ;;  %v46_v30 = vand.u32 31, %v44_v28 }
  0x10   :  { %v150_v58 = vsub.s32 32, %v149_v33  ;;  %v152_v61 = vshll.u32 %v1560_v37, %v149_v33  ;;  %v155_v5 = vshll.u32 %v1561_v39, %v149_v33  ;;  %v158_v25 = vshll.u32 %v1562_v41, %v149_v33 }
  0x11   :  { %v47_v36 = vsub.s32 32, %v46_v30  ;;  %v49_v38 = vshll.u32 %v1560_v37, %v46_v30  ;;  %v52_v40 = vshll.u32 %v1561_v39, %v46_v30  ;;  %v55_v42 = vshll.u32 %v1562_v41, %v46_v30 }
  0x12   :  { %v58_v44 = vshll.u32 %v1563_v43, %v46_v30  ;;  %v61_v46 = vshll.u32 %v1564_v45, %v46_v30  ;;  %vm64_vm3 = vcmp.lt.s32.totalorder %v45_v29, 1  ;;  %vm65_vm4 = vcmp.lt.s32.totalorder %v45_v29, 2 }
  0x13   :  { %v48_v48 = vshrl.u32 %v1560_v37, %v47_v36  ;;  %v50_v49 = vshrl.u32 %v1561_v39, %v47_v36  ;;  %v53_v50 = vshrl.u32 %v1562_v41, %v47_v36  ;;  %v56_v51 = vshrl.u32 %v1563_v43, %v47_v36 }
  0x14   :  { %v59_v52 = vshrl.u32 %v1564_v45, %v47_v36  ;;  %v62_v54 = vshrl.u32 %v1565_v53, %v47_v36  ;;  %vm67_vm5 = vcmp.lt.s32.totalorder %v45_v29, 4  ;;  %vm66_vm6 = vcmp.lt.s32.totalorder %v45_v29, 3 }
  0x15   :  { %v51_v55 = vor.u32 %v50_v49, %v49_v38  ;;  %v54_v56 = vor.u32 %v53_v50, %v52_v40  ;;  %v57_v57 = vor.u32 %v56_v51, %v55_v42  ;;  %v151_v12 = vshrl.u32 %v1560_v37, %v150_v58 }
  0x16   :  { %v60_v59 = vor.u32 %v59_v52, %v58_v44  ;;  %v63_v60 = vor.u32 %v62_v54, %v61_v46  ;;  %v153_v14 = vshrl.u32 %v1561_v39, %v150_v58  ;;  %v156_v18 = vshrl.u32 %v1562_v41, %v150_v58 }
  0x17   :  { %v68_v62 = vsel %vm64_vm3, %v48_v48, %v51_v55  ;;  %v69_v63 = vsel %vm67_vm5, %v57_v57, 2102212464  ;;  %v72_v0 = vsel %vm64_vm3, %v51_v55, %v54_v56  ;;  %v76_v1 = vsel %vm64_vm3, %v54_v56, %v57_v57 }
  0x18   :  { %v70_v2 = vsel %vm66_vm6, %v54_v56, %v69_v63  ;;  %v73_v3 = vsel %vm67_vm5, %v60_v59, 920167782  ;;  %v77_v4 = vsel %vm67_vm5, %v63_v60, 1326507024  ;;  %v154_v23 = vor.u32 %v153_v14, %v152_v61 }
  0x19   :  { %v74_v6 = vsel %vm66_vm6, %v57_v57, %v73_v3  ;;  %v78_v11 = vsel %vm66_vm6, %v60_v59, %v77_v4  ;;  %v71_v15 = vsel %vm65_vm4, %v68_v62, %v70_v2  ;;  %v157_v24 = vor.u32 %v156_v18, %v155_v5  ;;  %v27_v2 = vld [vmem:[%s2133_s0 + $0x18] sm:$0x1f] }
  0x1a   :  { %v75_v16 = vsel %vm65_vm4, %v72_v0, %v74_v6  ;;  %v79_v17 = vsel %vm65_vm4, %v76_v1, %v78_v11  ;;  %v159_v26 = vshrl.u32 %v1563_v43, %v150_v58  ;;  %v161_v27 = vshll.u32 %v1563_v43, %v149_v33 }
  0x1b   :  { %v1651_v19 = vmul.u32.u64.low %v1619_v32, %v79_v17  ;;  %v1652_v20 = vmul.u32.u64.high %v1619_v32, %v79_v17, %v1651_v19  ;;  %v1655_v21 = vmul.u32.u64.low %v1619_v32, %v75_v16  ;;  %v1656_v22 = vmul.u32.u64.high %v1619_v32, %v75_v16, %v1655_v21 }
  0x1c   :  { %v162_v28 = vshrl.u32 %v1564_v45, %v150_v58  ;;  %v164_v29 = vshll.u32 %v1564_v45, %v149_v33  ;;  %v165_v30 = vshrl.u32 %v1565_v53, %v150_v58  ;;  %v87_v31 = vmul.u32 %v1619_v32, %v71_v15 }
  0x1d   :  { %v160_v36 = vor.u32 %v159_v26, %v158_v25  ;;  %vm167_vm8 = vcmp.lt.s32.totalorder %v1630_v47, 1  ;;  %vm168_vm9 = vcmp.lt.s32.totalorder %v1630_v47, 2  ;;  %vm89_vm10 = vc.u32 %v1652_v20, %v1655_v21 }
  0x1e   :  { %v90_v38 = vadd.s32 1, %v1656_v22  ;;  %v163_v40 = vor.u32 %v162_v28, %v161_v27  ;;  %vm169_vm11 = vcmp.lt.s32.totalorder %v1630_v47, 3  ;;  %v166_v42 = vor.u32 %v165_v30, %v164_v29 }
  0x1f   :  { %vm170_vm12 = vcmp.lt.s32.totalorder %v1630_v47, 4  ;;  %v171_v33 = vsel %vm167_vm8, %v151_v12, %v154_v23  ;;  %v175_v44 = vsel %vm167_vm8, %v154_v23, %v157_v24  ;;  %v179_v49 = vsel %vm167_vm8, %v157_v24, %v160_v36 }
  0x20   :  { %v91_v32 = vsel %vm89_vm10, %v90_v38, %v1656_v22  ;;  %v172_v46 = vsel %vm170_vm12, %v160_v36, 2102212464  ;;  %v176_v48 = vsel %vm170_vm12, %v163_v40, 920167782  ;;  %v180_v54 = vsel %vm170_vm12, %v166_v42, 1326507024 }
  0x21   :  { %v92_v50 = vadd.s32 %v91_v32, %v87_v31  ;;  %v173_v51 = vsel %vm169_vm11, %v157_v24, %v172_v46  ;;  %v177_v52 = vsel %vm169_vm11, %v160_v36, %v176_v48  ;;  %v181_v57 = vsel %vm169_vm11, %v163_v40, %v180_v54 }
  0x22   :  { %v174_v55 = vsel %vm168_vm9, %v171_v33, %v173_v51  ;;  %v178_v56 = vsel %vm168_vm9, %v175_v44, %v177_v52  ;;  %v250_v58 = vsel %vm249_vm7, %v1623_v35, 0  ;;  %v182_v60 = vsel %vm168_vm9, %v179_v49, %v181_v57 }
  0x23   :  { %v93_v59 = vadd.s32 536870912, %v92_v50  ;;  %v1684_v61 = vmul.u32.u64.low %v1621_v34, %v178_v56  ;;  %v1685_v62 = vmul.u32.u64.high %v1621_v34, %v178_v56, %v1684_v61  ;;  %v238_v1 = vand.u32 2147483647, %v1608_v9 }
  0x24   :  { %v1689_v63 = vmul.u32.u64.low %v1621_v34, %v182_v60  ;;  %v1690_v0 = vmul.u32.u64.high %v1621_v34, %v182_v60, %v1689_v63  ;;  %v252_v3 = vand.u32 31, %v250_v58  ;;  %v190_v47 = vmul.u32 %v1621_v34, %v174_v55 }
  0x25   :  { %v1696_v35 = vshrl.u32 %v93_v59, 30  ;;  %v193_v5 = vadd.s32 1, %v1685_v62  ;;  %v1701_v11 = vmul.f32 0.5, %v27_v2  ;;  %v245_v12 = vand.u32 8388607, %v238_v1 }
  0x26   :  { %v253_v6 = vsub.s32 32, %v252_v3  ;;  %vm192_vm13 = vc.u32 %v1690_v0, %v1684_v61  ;;  %v251_v16 = vshrl.u32 %v250_v58, 5  ;;  %v255_v34 = vshll.u32 %v1560_v37, %v252_v3 }
  0x27   :  { %v95_v4 = vshll.u32 %v1696_v35, 30  ;;  %v194_v15 = vsel %vm192_vm13, %v193_v5, %v1685_v62  ;;  %v258_v19 = vshll.u32 %v1561_v39, %v252_v3  ;;  %v261_v24 = vshll.u32 %v1562_v41, %v252_v3 }
  0x28   :  { %v195_v17 = vadd.s32 %v194_v15, %v190_v47  ;;  %v256_v18 = vshrl.u32 %v1561_v39, %v253_v6  ;;  %v259_v22 = vshrl.u32 %v1562_v41, %v253_v6  ;;  %v262_v25 = vshrl.u32 %v1563_v43, %v253_v6 }
  0x29   :  { %v1707_v14 = vsub.s32 %v92_v50, %v95_v4  ;;  %v264_v27 = vshll.u32 %v1563_v43, %v252_v3  ;;  %v344_v28 = vand.u32 2139095040, %v1701_v11  ;;  %v246_v30 = vor.u32 8388608, %v245_v12 }
  0x2a   :  { %v196_v26 = vadd.s32 536870912, %v195_v17  ;;  %v257_v31 = vor.u32 %v256_v18, %v255_v34  ;;  %vm270_vm14 = vcmp.lt.s32.totalorder %v251_v16, 1  ;;  %v260_v38 = vor.u32 %v259_v22, %v258_v19 }
  0x2b   :  { %v98_v23 = vsub.s32 0, %v1707_v14  ;;  %v265_v40 = vshrl.u32 %v1564_v45, %v253_v6  ;;  %v267_v42 = vshll.u32 %v1564_v45, %v252_v3  ;;  %v263_v44 = vor.u32 %v262_v25, %v261_v24 }
  0x2c   :  { %v1720_v36 = vshrl.u32 %v196_v26, 30  ;;  %v268_v32 = vshrl.u32 %v1565_v53, %v253_v6  ;;  %vm273_vm15 = vcmp.lt.s32.totalorder %v251_v16, 4  ;;  %vm272_vm0 = vcmp.lt.s32.totalorder %v251_v16, 3 }
  0x2d   :  { %v1438_v29 = vmin.u32 %v98_v23, %v1707_v14  ;;  %v266_v48 = vor.u32 %v265_v40, %v264_v27  ;;  %v345_v49 = vshrl.u32 %v344_v28, 23  ;;  %vm271_vm1 = vcmp.lt.s32.totalorder %v251_v16, 2 }
  0x2e   :  { %v198_v46 = vshll.u32 %v1720_v36, 30  ;;  %v269_v51 = vor.u32 %v268_v32, %v267_v42  ;;  %v286_v52 = vshll.u32 %v246_v30, 8  ;;  %v254_v55 = vshrl.u32 %v1560_v37, %v253_v6 }
  0x2f   :  { %v100_v33 = vclz %v1438_v29  ;;  %v278_v56 = vsel %vm270_vm14, %v257_v31, %v260_v38  ;;  %v279_v57 = vsel %vm273_vm15, %v266_v48, 920167782  ;;  %v275_v58 = vsel %vm273_vm15, %v263_v44, 2102212464 }
  0x30   :  { %v1726_v54 = vsub.s32 %v195_v17, %v198_v46  ;;  %v280_v59 = vsel %vm272_vm0, %v263_v44, %v279_v57  ;;  %v283_v60 = vsel %vm273_vm15, %v269_v51, 1326507024  ;;  %v282_v2 = vsel %vm270_vm14, %v260_v38, %v263_v44 }
  0x31   :  { %v1439_v50 = vadd.s32 4294967294, %v100_v33  ;;  %v1449_v3 = vadd.s32 4294967169, %v345_v49  ;;  %v284_v47 = vsel %vm272_vm0, %v266_v48, %v283_v60  ;;  %v274_v5 = vsel %vm270_vm14, %v254_v55, %v257_v31 }
  0x32   :  { %v201_v63 = vsub.s32 0, %v1726_v54  ;;  %v276_v6 = vsel %vm272_vm0, %v260_v38, %v275_v58  ;;  %v281_v12 = vsel %vm271_vm1, %v278_v56, %v280_v59  ;;  %v88_v15 = vadd.s32 %v1655_v21, %v1652_v20 }
  0x33   :  { %vm1440_vm2 = vcmp.lt.s32.totalorder %v1439_v50, 0  ;;  %v285_v17 = vsel %vm271_vm1, %v282_v2, %v284_v47  ;;  %v351_v23 = vadd.s32 1, %v1449_v3  ;;  %v277_v25 = vsel %vm271_vm1, %v274_v5, %v276_v6 }
  0x34   :  { %v103_v62 = vsel %vm1440_vm2, 0, %v1439_v50  ;;  %v1442_v4 = vmin.u32 %v201_v63, %v1726_v54  ;;  %v1744_v19 = vmul.u32.u64.low %v286_v52, %v285_v17  ;;  %v1745_v22 = vmul.u32.u64.high %v286_v52, %v285_v17, %v1744_v19 }
  0x35   :  { %v108_v34 = vsub.s32 4294967266, %v103_v62  ;;  %v104_v24 = vsub.s32 32, %v103_v62  ;;  %v1748_v26 = vmul.u32.u64.low %v286_v52, %v281_v12  ;;  %v1749_v27 = vmul.u32.u64.high %v286_v52, %v281_v12, %v1748_v26 }
  0x36   :  { %v203_v18 = vclz %v1442_v4  ;;  %vm352_vm3 = vcmp.gt.s32.totalorder %v351_v23, 0  ;;  %v341_v20 = vand.u32 2147483647, %v1701_v11  ;;  %v105_v30 = vshll.u32 %v1707_v14, %v103_v62 }
  0x37   :  { %v109_v29 = vadd.s32 127, %v108_v34  ;;  %v353_v21 = vsel %vm352_vm3, %v351_v23, 0  ;;  %v293_v31 = vmul.u32 %v286_v52, %v277_v25  ;;  %vm295_vm5 = vc.u32 %v1745_v22, %v1748_v26 }
  0x38   :  { %v1443_v28 = vadd.s32 4294967294, %v203_v18  ;;  %v106_v38 = vshrl.u32 %v88_v15, %v104_v24  ;;  %v296_v40 = vadd.s32 1, %v1749_v27  ;;  %v355_v42 = vand.u32 31, %v353_v21 }
  0x39   :  { %v110_v44 = vshll.u32 %v109_v29, 23  ;;  %v348_v46 = vand.u32 8388607, %v341_v20  ;;  %v191_v50 = vadd.s32 %v1684_v61, %v1690_v0  ;;  %v354_v2 = vshrl.u32 %v353_v21, 5 }
  0x3a   :  { %vm1444_vm4 = vcmp.lt.s32.totalorder %v1443_v28, 0  ;;  %v297_v32 = vsel %vm295_vm5, %v296_v40, %v1749_v27  ;;  %v356_v48 = vsub.s32 32, %v355_v42  ;;  %v107_v14 = vor.u32 %v106_v38, %v105_v30 }
  0x3b   :  { %v206_v16 = vsel %vm1444_vm4, 0, %v1443_v28  ;;  %v298_v49 = vadd.s32 %v297_v32, %v293_v31  ;;  %v358_v56 = vshll.u32 %v1560_v37, %v355_v42  ;;  %v111_v58 = vor.u32 4788187, %v110_v44 }
  0x3c   :  { %v211_v33 = vsub.s32 4294967266, %v206_v16  ;;  %v207_v51 = vsub.s32 32, %v206_v16  ;;  %v359_v57 = vshrl.u32 %v1561_v39, %v356_v48  ;;  %v349_v59 = vor.u32 8388608, %v348_v46 }
  0x3d   :  { %v299_v55 = vadd.s32 536870912, %v298_v49  ;;  %v361_v60 = vshll.u32 %v1561_v39, %v355_v42  ;;  %v362_v62 = vshrl.u32 %v1562_v41, %v356_v48  ;;  %v364_v3 = vshll.u32 %v1562_v41, %v355_v42 }
  0x3e   :  { %v212_v52 = vadd.s32 127, %v211_v33  ;;  %v365_v61 = vshrl.u32 %v1563_v43, %v356_v48  ;;  %v208_v0 = vshll.u32 %v1726_v54, %v206_v16  ;;  %v209_v47 = vshrl.u32 %v191_v50, %v207_v51 }
  0x3f   :  { %v1766_v63 = vshrl.u32 %v299_v55, 30  ;;  %v367_v4 = vshll.u32 %v1563_v43, %v355_v42  ;;  %v368_v5 = vshrl.u32 %v1564_v45, %v356_v48  ;;  %v114_v6 = vcvt.s32.f32 %v107_v14 }
  0x40   :  { %v213_v12 = vshll.u32 %v212_v52, 23  ;;  %v360_v15 = vor.u32 %v359_v57, %v358_v56  ;;  %v363_v34 = vor.u32 %v362_v62, %v361_v60  ;;  %v370_v18 = vshll.u32 %v1564_v45, %v355_v42 }
  0x41   :  { %v301_v39 = vshll.u32 %v1766_v63, 30  ;;  %v369_v17 = vor.u32 %v368_v5, %v367_v4  ;;  %v371_v41 = vshrl.u32 %v1565_v53, %v356_v48  ;;  %v112_v19 = vand.u32 2147483647, %v111_v58 }
  0x42   :  { %v366_v24 = vor.u32 %v365_v61, %v364_v3  ;;  %vm373_vm6 = vcmp.lt.s32.totalorder %v354_v2, 1  ;;  %v210_v54 = vor.u32 %v209_v47, %v208_v0  ;;  %v357_v43 = vshrl.u32 %v1560_v37, %v356_v48 }
  0x43   :  { %v302_v23 = vsub.s32 %v298_v49, %v301_v39  ;;  %vm376_vm7 = vcmp.lt.s32.totalorder %v354_v2, 4  ;;  %v389_v25 = vshll.u32 %v349_v59, 8  ;;  %v372_v28 = vor.u32 %v371_v41, %v370_v18 }
  0x44   :  { %vm375_vm8 = vcmp.lt.s32.totalorder %v354_v2, 3  ;;  %v378_v29 = vsel %vm376_vm7, %v366_v24, 2102212464  ;;  %v214_v21 = vor.u32 4788187, %v213_v12  ;;  %vm374_vm9 = vcmp.lt.s32.totalorder %v354_v2, 2 }
  0x45   :  { %v304_v27 = vsub.s32 0, %v302_v23  ;;  %v381_v45 = vsel %vm373_vm6, %v360_v15, %v363_v34  ;;  %v382_v53 = vsel %vm376_vm7, %v369_v17, 920167782  ;;  %v115_v30 = vmul.f32 %v114_v6, %v112_v19 }
  0x46   :  { %v377_v38 = vsel %vm373_vm6, %v357_v43, %v360_v15  ;;  %v379_v16 = vsel %vm375_vm8, %v363_v34, %v378_v29  ;;  %v383_v37 = vsel %vm375_vm8, %v366_v24, %v382_v53  ;;  %v385_v40 = vsel %vm373_vm6, %v363_v34, %v366_v24 }
  0x47   :  { %v1446_v31 = vmin.u32 %v304_v27, %v302_v23  ;;  %v217_v42 = vcvt.s32.f32 %v210_v54  ;;  %v384_v44 = vsel %vm374_vm9, %v381_v45, %v383_v37  ;;  %v386_v32 = vsel %vm376_vm7, %v372_v28, 1326507024 }
  0x48   :  { %v215_v46 = vand.u32 2147483647, %v214_v21  ;;  %v387_v48 = vsel %vm375_vm8, %v369_v17, %v386_v32  ;;  %v1787_v49 = vmul.u32.u64.low %v389_v25, %v384_v44  ;;  %v1788_v14 = vmul.u32.u64.high %v389_v25, %v384_v44, %v1787_v49 }
  0x49   :  { %v306_v33 = vclz %v1446_v31  ;;  %v380_v51 = vsel %vm374_vm9, %v377_v38, %v379_v16  ;;  %v388_v52 = vsel %vm374_vm9, %v385_v40, %v387_v48  ;;  %v116_v55 = vxor.u32 2147483648, %v115_v30 }
  0x4a   :  { %v1793_v56 = vmul.u32.u64.low %v389_v25, %v388_v52  ;;  %v1794_v57 = vmul.u32.u64.high %v389_v25, %v388_v52, %v1793_v56  ;;  %vm34_vm10 = vcmp.lt.s32.totalorder %v1604_v7, 0  ;;  %v294_v58 = vadd.s32 %v1748_v26, %v1745_v22 }
  0x4b   :  { %v1447_v50 = vadd.s32 4294967294, %v306_v33  ;;  %v218_v59 = vmul.f32 %v217_v42, %v215_v46  ;;  %v396_v62 = vmul.u32 %v389_v25, %v380_v51  ;;  %v399_v3 = vadd.s32 1, %v1788_v14 }
  0x4c   :  { %vm1802_vm12 = vcmp.le.f32.partialorder %v32_v10, 0.7853982  ;;  %v117_v4 = vsel %vm34_vm10, %v116_v55, %v115_v30  ;;  %vm398_vm13 = vc.u32 %v1794_v57, %v1787_v49  ;;  %vm137_vm14 = vcmp.lt.s32.totalorder %v1606_v8, 0 }
  0x4d   :  { %vm1448_vm11 = vcmp.lt.s32.totalorder %v1447_v50, 0  ;;  %v400_v5 = vsel %vm398_vm13, %v399_v3, %v1788_v14  ;;  %v219_v6 = vxor.u32 2147483648, %v218_v59  ;;  %v118_v39 = vsub.s32 4, %v1696_v35 }
  0x4e   :  { %v309_v60 = vsel %vm1448_vm11, 0, %v1447_v50  ;;  %v401_v12 = vadd.s32 %v400_v5, %v396_v62  ;;  %v120_v10 = vsel %vm1802_vm12, %v1604_v7, %v117_v4  ;;  %vm1818_vm15 = vcmp.le.f32.partialorder %v135_v13, 0.7853982 }
  0x4f   :  { %v310_v61 = vsub.s32 32, %v309_v60  ;;  %v311_v0 = vshll.u32 %v302_v23, %v309_v60  ;;  %v314_v47 = vsub.s32 4294967266, %v309_v60  ;;  %1541 = vcosq.f32 %v120_v10 }
  0x50   :  { %v402_v17 = vadd.s32 536870912, %v401_v12  ;;  %v220_v23 = vsel %vm137_vm14, %v219_v6, %v218_v59  ;;  %v119_v54 = vsel %vm34_vm10, %v118_v39, %v1696_v35  ;;  %1543 = vsinq.f32 %v120_v10 }
  0x51   :  { %v312_v22 = vshrl.u32 %v294_v58, %v310_v61  ;;  %v315_v26 = vadd.s32 127, %v314_v47  ;;  %v865_v27 = vlaneseq  ;;  %v223_v13 = vsel %vm1818_vm15, %v1606_v8, %v220_v23 }
  0x52   :  { %v1824_v24 = vshrl.u32 %v402_v17, 30  ;;  %v121_v29 = vsel %vm1802_vm12, 0, %v119_v54  ;;  %v221_v21 = vsub.s32 4, %v1720_v36  ;;  %vm240_vm0 = vcmp.lt.s32.totalorder %v1608_v9, 0 }
  0x53   :  { %v313_v15 = vor.u32 %v312_v22, %v311_v0  ;;  %v316_v34 = vshll.u32 %v315_v26, 23  ;;  %vm1841_vm1 = vcmp.le.f32.partialorder %v238_v1, 0.7853982  ;;  %1545 = vcosq.f32 %v223_v13 }
  0x54   :  { %v404_v25 = vshll.u32 %v1824_v24, 30  ;;  %v324_v30 = vsub.s32 4, %v1766_v63  ;;  %v1847_v38 = vshrl.u32 %v865_v27, 7  ;;  %1547 = vsinq.f32 %v223_v13 }
  0x55   :  { %v317_v18 = vor.u32 4788187, %v316_v34  ;;  %v320_v41 = vcvt.s32.f32 %v313_v15  ;;  %v537_v37 = vadd.s32 3, %v121_v29  ;;  %v1851_v40 = vand.u32 3, %v121_v29 }
  0x56   :  { %v1837_v45 = vsub.s32 %v401_v12, %v404_v25  ;;  %v222_v1 = vsel %vm137_vm14, %v221_v21, %v1720_v36  ;;  %v325_v32 = vsel %vm240_vm0, %v324_v30, %v1766_v63  ;;  %v1864_v48 = vsub.s32 2, %v1847_v38 }
  0x57   :  { %v318_v43 = vand.u32 2147483647, %v317_v18  ;;  %v224_v14 = vsel %vm1818_vm15, 0, %v222_v1  ;;  %v538_v36 = vand.u32 3, %v537_v37  ;;  %vm126_vm2 = vcmp.lt.s32.totalorder %v1851_v40, 2 }
  0x58   :  { %v407_v31 = vsub.s32 0, %v1837_v45  ;;  %vm343_vm3 = vcmp.lt.s32.totalorder %v1701_v11, 0  ;;  %vm127_vm4 = vcmp.eq.s32.totalorder %v1851_v40, 0  ;;  %v1871_v63 = vand.u32 3, %v224_v14 }
  0x59   :  { %v321_v28 = vmul.f32 %v320_v41, %v318_v43  ;;  %v1542_v44 = vpop.eup %1541  ;;  %v327_v55 = vsel %vm1841_vm1, 0, %v325_v32  ;;  %v397_v56 = vadd.s32 %v1787_v49, %v1794_v57  ;;  %v641_v58 = vadd.s32 3, %v224_v14 }
  0x5a   :  { %v1450_v33 = vmin.u32 %v407_v31, %v1837_v45  ;;  %v1544_v50 = vpop.eup %1543  ;;  %v131_v52 = vxor.u32 2147483648, %v1542_v44  ;;  %vm130_vm6 = vcmp.eq.s32.totalorder %v1851_v40, 2  ;;  %vm1880_vm7 = vcmp.le.f32.partialorder %v341_v20, 0.7853982 }
  0x5b   :  { %v322_v53 = vxor.u32 2147483648, %v321_v28  ;;  %v128_v59 = vxor.u32 2147483648, %v1544_v50  ;;  %vm540_vm8 = vcmp.eq.s32.totalorder %v538_v36, 0  ;;  %v1566_v3 = vmov 0.0  }
  0x5c   :  { %v409_v46 = vclz %v1450_v33  ;;  %1154 = vmatprep.mubr.f32.mxu0 %v1566_v3  ;;  %1243 = vmatprep.mubr.f32.mxu1 %v1566_v3  ;;  %vm124_vm9 = vweird.f32 %v1604_v7  ;;  %vm543_vm10 = vcmp.eq.s32.totalorder %v538_v36, 2  ;;  %vm229_vm11 = vcmp.lt.s32.totalorder %v1871_v63, 2 }
  0x5d   :  { %v323_v16 = vsel %vm240_vm0, %v322_v53, %v321_v28  ;;  %v1546_v61 = vpop.eup %1545  ;;  %v1889_v20 = vand.u32 3, %v327_v55  ;;  %v427_v2 = vsub.s32 4, %v1824_v24  ;;  %v745_v4 = vadd.s32 3, %v327_v55 }
  0x5e   :  { %v326_v42 = vsel %vm1841_vm1, %v1608_v9, %v323_v16  ;;  %v1451_v51 = vadd.s32 4294967294, %v409_v46  ;;  %v1548_v47 = vpop.eup %1547  ;;  %v132_v22 = vsel %vm130_vm6, %v131_v52, %v1544_v50  ;;  %v642_v6 = vand.u32 3, %v641_v58 }
  0x5f   :  { %1549 = vcosq.f32 %v326_v42  ;;  %v129_v12 = vsel %vm127_vm4, %v1542_v44, %v128_v59  ;;  %vm227_vm12 = vweird.f32 %v1606_v8  ;;  %vm539_vm13 = vcmp.lt.s32.totalorder %v538_v36, 2 }
  0x60   :  { %1551 = vsinq.f32 %v326_v42  ;;  %vm1452_vm5 = vcmp.lt.s32.totalorder %v1451_v51, 0  ;;  %v542_v39 = vsel %vm540_vm8, %v1542_v44, %v128_v59  ;;  %v545_v10 = vsel %vm543_vm10, %v131_v52, %v1544_v50 }
  0x61   :  { %v412_v62 = vsel %vm1452_vm5, 0, %v1451_v51  ;;  %v231_v15 = vxor.u32 2147483648, %v1548_v47  ;;  %v234_v34 = vxor.u32 2147483648, %v1546_v61  ;;  %vm230_vm14 = vcmp.eq.s32.totalorder %v1871_v63, 0 }
  0x62   :  { %v413_v49 = vsub.s32 32, %v412_v62  ;;  %v414_v57 = vshll.u32 %v1837_v45, %v412_v62  ;;  %v417_v0 = vsub.s32 4294967266, %v412_v62  ;;  %vm233_vm15 = vcmp.eq.s32.totalorder %v1871_v63, 2 }
  0x63   :  { %v428_v19 = vsel %vm343_vm3, %v427_v2, %v1824_v24  ;;  %v746_v23 = vand.u32 3, %v745_v4  ;;  %vm644_vm0 = vcmp.eq.s32.totalorder %v642_v6, 0  ;;  %vm647_vm1 = vcmp.eq.s32.totalorder %v642_v6, 2 }
  0x64   :  { %v415_v26 = vshrl.u32 %v397_v56, %v413_v49  ;;  %v418_v5 = vadd.s32 127, %v417_v0  ;;  %v133_v27 = vsel %vm126_vm2, %v129_v12, %v132_v22  ;;  %vm333_vm4 = vcmp.eq.s32.totalorder %v1889_v20, 0 }
  0x65   :  { %v546_v13 = vsel %vm539_vm13, %v542_v39, %v545_v10  ;;  %vm643_vm5 = vcmp.lt.s32.totalorder %v642_v6, 2  ;;  %v232_v28 = vsel %vm230_vm14, %v1546_v61, %v231_v15  ;;  %v235_v29 = vsel %vm233_vm15, %v234_v34, %v1548_v47 }
  0x66   :  { %v416_v17 = vor.u32 %v415_v26, %v414_v57  ;;  %v419_v18 = vshll.u32 %v418_v5, 23  ;;  %vm330_vm6 = vweird.f32 %v1608_v9  ;;  %v430_v24 = vsel %vm1880_vm7, 0, %v428_v19 }
  0x67   :  { %v646_v53 = vsel %vm644_vm0, %v1546_v61, %v231_v15  ;;  %v649_v30 = vsel %vm647_vm1, %v234_v34, %v1548_v47  ;;  %vm336_vm8 = vcmp.eq.s32.totalorder %v1889_v20, 2  ;;  %vm748_vm2 = vcmp.eq.s32.totalorder %v746_v23, 0 }
  0x68   :  { %v420_v43 = vor.u32 4788187, %v419_v18  ;;  %v423_v25 = vcvt.s32.f32 %v416_v17  ;;  %vm751_vm10 = vcmp.eq.s32.totalorder %v746_v23, 2  ;;  %v1913_v16 = vsel %vm124_vm9, nan, %v133_v27 }
  0x69   :  { %v1550_v41 = vpop.eup %1549  ;;  %v236_v37 = vsel %vm229_vm11, %v232_v28, %v235_v29  ;;  %vm332_vm13 = vcmp.lt.s32.totalorder %v1889_v20, 2  ;;  %v849_v40 = vadd.s32 3, %v430_v24  ;;  %v1920_v42 = vsel %vm124_vm9, nan, %v546_v13 }
  0x6a   :  { %v1552_v54 = vpop.eup %1551  ;;  %v421_v21 = vand.u32 2147483647, %v420_v43  ;;  %v337_v35 = vxor.u32 2147483648, %v1550_v41  ;;  %v650_v33 = vsel %vm643_vm5, %v646_v53, %v649_v30  ;;  %vm747_vm14 = vcmp.lt.s32.totalorder %v746_v23, 2 }
  0x6b   :  { %v334_v45 = vxor.u32 2147483648, %v1552_v54  ;;  %v1927_v36 = vsel %vm227_vm12, nan, %v236_v37  ;;  %v1931_v51 = vand.u32 3, %v430_v24  ;;  %v1934_v7 = vsub.s32 3, %v1847_v38 }
  0x6c   :  { %v424_v31 = vmul.f32 %v423_v25, %v421_v21  ;;  %v338_v32 = vsel %vm336_vm8, %v337_v35, %v1552_v54  ;;  %v753_v14 = vsel %vm751_vm10, %v337_v35, %v1552_v54  ;;  %v1941_v63 = vsel %vm227_vm12, nan, %v650_v33 }
  0x6d   :  { %v335_v44 = vsel %vm333_vm4, %v1550_v41, %v334_v45  ;;  %v750_v46 = vsel %vm748_vm2, %v1550_v41, %v334_v45  ;;  %v1943_v55 = vand.u32 3, %v849_v40  ;;  %v868_v56 = vrot.slane %v1913_v16, %v1864_v48 }
  0x6e   :  { %v425_v1 = vxor.u32 2147483648, %v424_v31  ;;  %v339_v58 = vsel %vm332_vm13, %v335_v44, %v338_v32  ;;  %v754_v59 = vsel %vm747_vm14, %v750_v46, %v753_v14  ;;  %v1950_v62 = vsub.s32 4, %v1847_v38 }
  0x6f   :  { %v872_v60 = vrot.slane %v1927_v36, %v1864_v48  ;;  %v884_v8 = vrot.slane %v1920_v42, %v1864_v48  ;;  %v1957_v61 = vsub.s32 1, %v1847_v38  ;;  %v888_v49 = vrot.slane %v1941_v63, %v1864_v48 }
  0x70   :  { %v426_v50 = vsel %vm343_vm3, %v425_v1, %v424_v31  ;;  %vm439_vm3 = vcmp.eq.s32.totalorder %v1931_v51, 2  ;;  %v908_v57 = vrot.slane %v1913_v16, %v1934_v7  ;;  %v912_v0 = vrot.slane %v1927_v36, %v1934_v7 }
  0x71   :  { %v429_v52 = vsel %vm1880_vm7, %v1701_v11, %v426_v50  ;;  %v1968_v47 = vsel %vm330_vm6, nan, %v339_v58  ;;  %vm436_vm7 = vcmp.eq.s32.totalorder %v1931_v51, 0  ;;  %v1973_v20 = vsel %vm330_vm6, nan, %v754_v59 }
  0x72   :  { %1553 = vcosq.f32 %v429_v52  ;;  %vm852_vm9 = vcmp.eq.s32.totalorder %v1943_v55, 0  ;;  %v924_v2 = vrot.slane %v1920_v42, %v1934_v7  ;;  %vm435_vm11 = vcmp.lt.s32.totalorder %v1931_v51, 2 }
  0x73   :  { %1555 = vsinq.f32 %v429_v52  ;;  %vm851_vm12 = vcmp.lt.s32.totalorder %v1943_v55, 2  ;;  %vm855_vm15 = vcmp.eq.s32.totalorder %v1943_v55, 2  ;;  %v928_v4 = vrot.slane %v1941_v63, %v1934_v7 }
  0x74   :  { %v952_v22 = vrot.slane %v1913_v16, %v1950_v62  ;;  %v1986_v9 = vsub.s32 0, %v1847_v38  ;;  %vm433_vm0 = vweird.f32 %v1701_v11  ;;  %v956_v6 = vrot.slane %v1927_v36, %v1950_v62 }
  0x75   :  { %v968_v12 = vrot.slane %v1920_v42, %v1950_v62  ;;  %v972_v39 = vrot.slane %v1941_v63, %v1950_v62  ;;  %v996_v10 = vrot.slane %v1927_v36, %v1957_v61  ;;  %v876_v38 = vrot.slane %v1968_v47, %v1864_v48 }
  0x76   :  { %v892_v15 = vrot.slane %v1973_v20, %v1864_v48  ;;  %v1016_v34 = vrot.slane %v1941_v63, %v1957_v61  ;;  %v992_v17 = vrot.slane %v1913_v16, %v1957_v61  ;;  %v960_v18 = vrot.slane %v1968_v47, %v1950_v62 }
  0x77   :  { %v976_v41 = vrot.slane %v1973_v20, %v1950_v62  ;;  %v916_v19 = vrot.slane %v1968_v47, %v1934_v7  ;;  %v932_v23 = vrot.slane %v1973_v20, %v1934_v7  ;;  %v1036_v54 = vrot.slane %v1927_v36, %v1986_v9 }
  0x78   :  { %v1012_v43 = vrot.slane %v1920_v42, %v1957_v61  ;;  %v1032_v25 = vrot.slane %v1913_v16, %v1986_v9  ;;  %v1000_v27 = vrot.slane %v1968_v47, %v1957_v61  ;;  %v1060_v13 = vrot.slane %v1941_v63, %v1986_v9 }
  0x79   :  { %v2031_v28 = vrot.slane %v1920_v42, %v1986_v9  ;;  %v1020_v63 = vrot.slane %v1973_v20, %v1957_v61  ;;  %vm1077_vm6 = vcmask 261120  }
  0x7c   :  { %v1554_v29 = vpop.eup %1553 }
  0x7d   :  { %v1556_v30 = vpop.eup %1555  ;;  %v440_v31 = vxor.u32 2147483648, %v1554_v29 }
  0x7e   :  { %v437_v40 = vxor.u32 2147483648, %v1556_v30 }
  0x7f   :  { %v441_v44 = vsel %vm439_vm3, %v440_v31, %v1556_v30  ;;  %v857_v32 = vsel %vm855_vm15, %v440_v31, %v1556_v30 }
  0x80   :  { %v438_v36 = vsel %vm436_vm7, %v1554_v29, %v437_v40  ;;  %v854_v50 = vsel %vm852_vm9, %v1554_v29, %v437_v40 }
  0x81   :  { %v858_v58 = vsel %vm851_vm12, %v854_v50, %v857_v32 }
  0x83   :  { %v1988_v26 = vpop.permute.xlu0 %862  ;;  %v1991_v5 = vpop.permute.xlu1 %946 }
  0x84   :  { %vm864_vm1 = vcmp.eq.s32.totalorder %v1988_v26, 1  ;;  %vm948_vm4 = vcmp.eq.s32.totalorder %v1991_v5, 1 }
  0x85   :  { %v897_v21 = vsel %vm864_vm1, %v868_v56, %v884_v8  ;;  %v898_v24 = vsel %vm864_vm1, %v872_v60, %v888_v49  ;;  %v899_v45 = vsel %vm864_vm1, %v876_v38, %v892_v15  ;;  %v981_v53 = vsel %vm948_vm4, %v952_v22, %v968_v12 }
  0x86   :  { %v982_v16 = vsel %vm948_vm4, %v956_v6, %v972_v39  ;;  %v983_v37 = vsel %vm948_vm4, %v960_v18, %v976_v41  ;;  %v442_v56 = vsel %vm435_vm11, %v438_v36, %v441_v44  ;;  %v1040_v60 = vrot.slane %v1968_v47, %v1986_v9  ;;  %v20_v36 = vld [vmem:[%s2134_s1 + $0x18] sm:$0xff] }
  0x87   :  { %v443_v8 = vsel %vm433_vm0, nan, %v442_v56  ;;  %v859_v49 = vsel %vm433_vm0, nan, %v858_v58 }
  0x88   :  { %v903_v35 = vpop.permute.xlu0 %902  ;;  %v896_v51 = vrot.slane %v859_v49, %v1864_v48  ;;  %v936_v55 = vrot.slane %v859_v49, %v1934_v7  ;;  %v964_v22 = vrot.slane %v443_v8, %v1950_v62  ;;  %v980_v47 = vrot.slane %v859_v49, %v1950_v62 }
  0x89   :  { %vm904_vm5 = vcmp.eq.s32.totalorder %v903_v35, 1  ;;  %v1004_v38 = vrot.slane %v443_v8, %v1957_v61  ;;  %v1024_v15 = vrot.slane %v859_v49, %v1957_v61  ;;  %v1068_v31 = vrot.slane %v859_v49, %v1986_v9 }
  0x8a   :  { %v937_v1 = vsel %vm904_vm5, %v908_v57, %v924_v2  ;;  %v938_v42 = vsel %vm904_vm5, %v912_v0, %v928_v4  ;;  %v939_v33 = vsel %vm904_vm5, %v916_v19, %v932_v23  ;;  %v880_v2 = vrot.slane %v443_v8, %v1864_v48 }
  0x8b   :  { %v941_v46 = vmul.f32 %v937_v1, %v897_v21  ;;  %v942_v14 = vmul.f32 %v938_v42, %v898_v24  ;;  %v943_v52 = vmul.f32 %v939_v33, %v899_v45  ;;  %v920_v4 = vrot.slane %v443_v8, %v1934_v7 }
  0x8c   :  { %v900_v11 = vsel %vm864_vm1, %v880_v2, %v896_v51  ;;  %v984_v18 = vsel %vm948_vm4, %v964_v22, %v980_v47  ;;  %v1044_v19 = vrot.slane %v443_v8, %v1986_v9 }
  0x8d   :  { %v986_v59 = vmul.f32 %v982_v16, %v942_v14  ;;  %v985_v57 = vmul.f32 %v981_v53, %v941_v46  ;;  %v987_v0 = vmul.f32 %v983_v37, %v943_v52  ;;  %v940_v39 = vsel %vm904_vm5, %v920_v4, %v936_v55  ;;  %v19_v14 = vld [vmem:[%s2134_s1 + $0x10] sm:$0xff] }
  0x8e   :  { %v944_v48 = vmul.f32 %v940_v39, %v900_v11 }
  0x8f   :  { %v1006_v6 = vmul.f32 %v996_v10, %v986_v59  ;;  %v1026_v12 = vmul.f32 %v1016_v34, %v986_v59  ;;  %v1005_v62 = vmul.f32 %v992_v17, %v985_v57  ;;  %v1025_v10 = vmul.f32 %v1012_v43, %v985_v57 }
  0x90   :  { %v1007_v34 = vmul.f32 %v1000_v27, %v987_v0  ;;  %v988_v23 = vmul.f32 %v984_v18, %v944_v48  ;;  %v1027_v29 = vmul.f32 %v1020_v63, %v987_v0  ;;  %v1064_v43 = vrot.slane %v1973_v20, %v1986_v9  ;;  %v17_v20 = vld [vmem:[%s2134_s1] sm:$0xff] }
  0x91   :  { %v1046_v7 = vmul.f32 %v1036_v54, %v1006_v6  ;;  %v1050_v41 = vmul.f32 %v1036_v54, %v1026_v12  ;;  %v1070_v21 = vmul.f32 %v1060_v13, %v1006_v6  ;;  %v1045_v24 = vmul.f32 %v1032_v25, %v1005_v62 }
  0x92   :  { %v1049_v45 = vmul.f32 %v1032_v25, %v1025_v10  ;;  %v1047_v35 = vmul.f32 %v1040_v60, %v1007_v34  ;;  %v1074_v53 = vmul.f32 %v1060_v13, %v1026_v12  ;;  %v1008_v61 = vmul.f32 %v1004_v38, %v988_v23 }
  0x93   :  { %v1479_v26 = vpack.c.bf16 %v1050_v41, %v1046_v7  ;;  %v1028_v30 = vmul.f32 %v1024_v15, %v988_v23  ;;  %v1051_v5 = vmul.f32 %v1040_v60, %v1027_v29  ;;  %v1069_v16 = vmul.f32 %v2031_v28, %v1005_v62 }
  0x94   :  { %v1481_v54 = vpack.c.bf16 %v1049_v45, %v1045_v24  ;;  %v1073_v17 = vmul.f32 %v2031_v28, %v1025_v10  ;;  %v1048_v27 = vmul.f32 %v1044_v19, %v1008_v61  ;;  %v1483_v40 = vpack.c.bf16 %v1074_v53, %v1070_v21  ;;  %v18_v28 = vld [vmem:[%s2134_s1 + $0x8] sm:$0xff]  ;;  %v21_v53 = vld [vmem:[%s2135_s2] sm:$0x1f] }
  0x95   :  { %1480 = vmatprep.subr.bf16.mxu0 %v1479_v26  ;;  %v1052_v37 = vmul.f32 %v1044_v19, %v1028_v30  ;;  %v1072_v25 = vmul.f32 %v1068_v31, %v1008_v61  ;;  %v1489_v13 = vpack.c.bf16 %v1051_v5, %v1047_v35  ;;  %v1076_v1 = vmul.f32 %v1068_v31, %v1028_v30 }
  0x96   :  { %1482 = vmatpush1.bf16.msra.mxu0 %v1481_v54  ;;  %v1485_v33 = vpack.c.bf16 %v1073_v17, %v1069_v16  ;;  %v1071_v44 = vmul.f32 %v1064_v43, %v1007_v34  ;;  %v1075_v32 = vmul.f32 %v1064_v43, %v1027_v29 }
  0x97   :  { %v1487_v42 = vpack.c.bf16 %v1052_v37, %v1048_v27  ;;  %1484 = vmatprep.subr.bf16.mxu0 %v1483_v40  ;;  %v1491_v46 = vpack.c.bf16 %v1076_v1, %v1072_v25 }
  0x98   :  { %v1493_v9 = vpack.c.bf16 %v1075_v32, %v1071_v44 }
  0x99   :  { %1488 = vmatprep.subr.bf16.mxu1 %v1487_v42 }
  0x9a   :  { %1490 = vmatpush1.bf16.msra.mxu1 %v1489_v13  ;;  %1486 = vmatpush1.bf16.msra.mxu0 %v1485_v33 }
  0x9b   :  { %1492 = vmatprep.subr.bf16.mxu1 %v1491_v46 }
  0x9d   :  { %1469 = vmatmul.mubr.msk.f32.vlgmr.msra.gmra.mrb[0].mxu0 %vm1077_vm6, %v17_v20 }
  0x9e   :  { %1494 = vmatpush1.bf16.msra.mxu1 %v1493_v9  ;;  %1160 = vmatprep.mubr.f32.mxu0 %v1566_v3 }
  0xa1   :  { %1473 = vmatmul.mubr.msk.f32.vlgmr.msra.gmra.mrb[0].mxu1 %vm1077_vm6, %v17_v20  ;;  %1470 = vmatmul.mubr.msk.f32.gmra.mrb[2].mxu0 %vm1077_vm6, %v18_v28 }
  0xa2   :  { %1249 = vmatprep.mubr.f32.mxu1 %v1566_v3  ;;  %1166 = vmatprep.mubr.f32.mxu0 %v1566_v3 }
  0xa5   :  { %1474 = vmatmul.mubr.msk.f32.gmra.mrb[2].mxu1 %vm1077_vm6, %v18_v28  ;;  %1471 = vmatmul.mubr.msk.f32.gmra.mrb[4].mxu0 %vm1077_vm6, %v19_v14 }
  0xa6   :  { %1255 = vmatprep.mubr.f32.mxu1 %v1566_v3  ;;  %1172 = vmatprep.mubr.f32.mxu0 %v1566_v3 }
  0xa9   :  { %1475 = vmatmul.mubr.msk.f32.gmra.mrb[4].mxu1 %vm1077_vm6, %v19_v14  ;;  %1472 = vmatmul.mubr.msk.f32.gmra.mrb[6].mxu0 %vm1077_vm6, %v20_v36 }
  0xaa   :  { %1261 = vmatprep.mubr.f32.mxu1 %v1566_v3  ;;  %1351 = vmatprep.mubr.f32.mxu0 %v1566_v3 }
  0xad   :  { %1476 = vmatmul.mubr.msk.f32.gmra.mrb[6].mxu1 %vm1077_vm6, %v20_v36 }
  0xae   :  { %1422 = vmatprep.mubr.f32.mxu1 %v1566_v3 }
 0x170   :  { %v1156_v50 = vpop.f32.mrb[0].mxu0 }
 0x171   :  { %v1158_v52 = vpop.f32.mrb[1].mxu0  ;;  %v1268_v58 = vmul.f32 %v1156_v50, %v1156_v50 }
 0x172   :  { %v1269_v49 = vmul.f32 %v1158_v52, %v1158_v52 }
 0x174   :  { %v1245_v63 = vpop.f32.mrb[0].mxu1  ;;  %v1162_v56 = vpop.f32.mrb[2].mxu0 }
 0x175   :  { %v1247_v59 = vpop.f32.mrb[1].mxu1  ;;  %v1272_v60 = vmul.f32 %v1162_v56, %v1162_v56  ;;  %v1164_v8 = vpop.f32.mrb[3].mxu0  ;;  %v1270_v55 = vmul.f32 %v1245_v63, %v1245_v63 }
 0x176   :  { %v1273_v57 = vmul.f32 %v1164_v8, %v1164_v8  ;;  %v1271_v12 = vmul.f32 %v1247_v59, %v1247_v59 }
 0x177   :  { %v1497_v0 = vpack.c.bf16 %v1272_v60, %v1268_v58 }
 0x178   :  { %v1251_v2 = vpop.f32.mrb[2].mxu1  ;;  %v1495_v51 = vpack.c.bf16 %v1273_v57, %v1269_v49  ;;  %v1168_v4 = vpop.f32.mrb[4].mxu0 }
 0x179   :  { %v1274_v22 = vmul.f32 %v1251_v2, %v1251_v2  ;;  %v1253_v47 = vpop.f32.mrb[3].mxu1  ;;  %v1170_v6 = vpop.f32.mrb[5].mxu0  ;;  %v1276_v48 = vmul.f32 %v1168_v4, %v1168_v4 }
 0x17a   :  { %v1275_v3 = vmul.f32 %v1253_v47, %v1253_v47  ;;  %1496 = vmatprep.subr.bf16.mxu0 %v1495_v51  ;;  %v1277_v19 = vmul.f32 %v1170_v6, %v1170_v6 }
 0x17b   :  { %v1505_v11 = vpack.c.bf16 %v1274_v22, %v1270_v55  ;;  %1498 = vmatpush1.bf16.msra.mxu0 %v1497_v0 }
 0x17c   :  { %v1503_v39 = vpack.c.bf16 %v1275_v3, %v1271_v12  ;;  %v1257_v38 = vpop.f32.mrb[4].mxu1  ;;  %v1174_v15 = vpop.f32.mrb[6].mxu0 }
 0x17d   :  { %v1259_v18 = vpop.f32.mrb[5].mxu1  ;;  %v1280_v7 = vmul.f32 %v1174_v15, %v1174_v15  ;;  %v1176_v41 = vpop.f32.mrb[7].mxu0  ;;  %v1278_v26 = vmul.f32 %v1257_v38, %v1257_v38 }
 0x17e   :  { %1504 = vmatprep.subr.bf16.mxu1 %v1503_v39  ;;  %v1281_v62 = vmul.f32 %v1176_v41, %v1176_v41  ;;  %v1279_v24 = vmul.f32 %v1259_v18, %v1259_v18 }
 0x17f   :  { %1506 = vmatpush1.bf16.msra.mxu1 %v1505_v11  ;;  %v1501_v10 = vpack.c.bf16 %v1280_v7, %v1276_v48 }
 0x180   :  { %v1263_v34 = vpop.f32.mrb[6].mxu1  ;;  %v1499_v23 = vpack.c.bf16 %v1281_v62, %v1277_v19 }
 0x181   :  { %v1282_v29 = vmul.f32 %v1263_v34, %v1263_v34  ;;  %v1265_v21 = vpop.f32.mrb[7].mxu1 }
 0x182   :  { %v1283_v45 = vmul.f32 %v1265_v21, %v1265_v21  ;;  %1500 = vmatprep.subr.bf16.mxu0 %v1499_v23 }
 0x183   :  { %v1509_v35 = vpack.c.bf16 %v1282_v29, %v1278_v26  ;;  %1502 = vmatpush1.bf16.msra.mxu0 %v1501_v10 }
 0x184   :  { %v1507_v61 = vpack.c.bf16 %v1283_v45, %v1279_v24 }
 0x186   :  { %1508 = vmatprep.subr.bf16.mxu1 %v1507_v61  ;;  %1477 = vmatmul.mubr.msk.f32.vlgmr.msra.gmra.mrb[8].mxu0 %vm1077_vm6, %v21_v53 }
 0x187   :  { %1510 = vmatpush1.bf16.msra.mxu1 %v1509_v35 }
 0x18a   :  { %1478 = vmatmul.mubr.msk.f32.vlgmr.msra.gmra.mrb[8].mxu1 %vm1077_vm6, %v21_v53 }
 0x259   :  { %v1353_v30 = vpop.f32.mrb[8].mxu0 }
 0x25a   :  { %1429 = vst [vmem:[%s2136_s4] sm:$0x1f] %v1353_v30  ;;  %v1355_v5 = vpop.f32.mrb[9].mxu0 }
 0x25b   :  { %1430 = vst [vmem:[%s2136_s4 + $0x8] sm:$0x1f] %v1355_v5 }
 0x25d   :  { %v1424_v31 = vpop.f32.mrb[8].mxu1 }
 0x25e   :  { %1431 = vst [vmem:[%s2136_s4 + $0x10] sm:$0x1f] %v1424_v31  ;;  %v1426_v54 = vpop.f32.mrb[9].mxu1 }
 0x25f   :  { %1432 = vst [vmem:[%s2136_s4 + $0x18] sm:$0x1f] %v1426_v54 }

</bundles_post_ra>
